<compile_context>
chip_gen: v6e
topology: v6e:2x2x1
jax: 0.10.0
libtpu: 0.0.40
codegen_flags: <defaults>
</compile_context>

<pallas_src>
import jax
import jax.numpy as jnp
from jax.experimental import pallas as pl


# Packed parameter layout (columns of the [32, 8] f32 array):
#   cols 0:2 -> W1^T     (encoder Linear(2, 32) weight, transposed to [32, 2])
#   col  2   -> gamma    (BatchNorm1d weight)
#   col  3   -> beta     (BatchNorm1d bias)
#   col  4   -> w_fold   (= W2 @ w0, the folded [32, 1] output projection)
#   col  5   -> alpha    (PReLU slope, replicated down the column)
#   col  6   -> b_fold   (= b2 @ w0 + b0, replicated down the column)
#   col  7   -> unused pad
# b1 (encoder Linear bias) is intentionally absent: a per-channel constant
# cancels exactly in the BatchNorm mean-subtraction and leaves var unchanged.


def linear_mlp_kernel(xT_ref, p_ref, out_ref):
    # xT_ref : [2, N]  node features, nodes on the lane axis.
    # p_ref  : [32, 8] packed parameters (single VMEM tile).
    # out_ref: [1, N]  lane-dense row of scores.
    x0 = xT_ref[0:1, :]                                    # [1, N]
    x1 = xT_ref[1:2, :]                                    # [1, N]

    w1c0 = p_ref[:, 0:1]                                   # [32, 1]
    w1c1 = p_ref[:, 1:2]
    gamma = p_ref[:, 2:3]
    beta = p_ref[:, 3:4]
    w_fold = p_ref[:, 4:5]
    alpha = p_ref[:, 5:6]
    b_fold = p_ref[0:1, 6:7]                               # [1, 1]

    # --- encoder Linear(2, 32) as two rank-1 VPU updates (a K=2 MXU dot would
    #     waste a push/pop on this latency-bound chain). b1 omitted: it cancels
    #     exactly in the BatchNorm mean-subtraction below.
    h = w1c0 * x0 + w1c1 * x1                              # [32, N]

    # --- BatchNorm1d(32): training-mode batch statistics over all N nodes,
    #     fused single pass (sum and sum-of-squares together).
    inv_n = 1.0 / h.shape[-1]
    s1 = jnp.sum(h, axis=1, keepdims=True)                 # [32, 1]
    s2 = jnp.sum(h * h, axis=1, keepdims=True)             # [32, 1]
    mean = s1 * inv_n
    var = jnp.maximum(s2 * inv_n - mean * mean, 0.0)       # clamp: no NaN from cancellation
    scale = gamma * jax.lax.rsqrt(var + 1e-5)              # gamma folded into scale
    h = (h - mean) * scale + beta

    # --- PReLU (single shared alpha); Dropout(p=0.0) == identity ---
    h = jnp.where(h > 0.0, h, h * alpha)

    # --- Linear(32, 32) -> Linear(32, 1), folded into one [32, 1] projection
    #     (precomputed in pack_params). Broadcast-multiply + cross-sublane
    #     reduce (VPU + XLU); result is a lane-dense [1, N] row.
    out_ref[...] = jnp.sum(h * w_fold, axis=0, keepdims=True) + b_fold


def pack_params(params):
    """One-time parameter preprocessing, hoisted off the per-call path."""
    w1t = params["w1"].T.astype(jnp.float32)                               # [32, 2]
    gamma = params["gamma"].reshape(32, 1).astype(jnp.float32)
    beta = params["beta"].reshape(32, 1).astype(jnp.float32)
    # Fold the two trailing linear layers (exact for the forward pass).
    w_fold = (params["w2"] @ params["wb"]).reshape(32, 1).astype(jnp.float32)
    b_fold = ((params["b2"] @ params["wb"]).reshape(()) +
              params["bb"].reshape(())).astype(jnp.float32)
    alpha = params["alpha"].reshape(()).astype(jnp.float32)
    return jnp.concatenate(
        [w1t, gamma, beta, w_fold,
         jnp.full((32, 1), alpha, jnp.float32),
         jnp.full((32, 1), b_fold, jnp.float32),
         jnp.zeros((32, 1), jnp.float32)],
        axis=1)                                                            # [32, 8]


@jax.jit
def linear_forward_xt(xT, packed):
    """xT: [2, N] node features (feature-major, preferred layout) -> scores [N]."""
    _, n = xT.shape
    out = pl.pallas_call(
        linear_mlp_kernel,
        out_shape=jax.ShapeDtypeStruct((1, n), jnp.float32),
        grid=(1,),                                          # all nodes in one step
        in_specs=[
            pl.BlockSpec((2, n), lambda i: (0, 0)),         # xT, single full block
            pl.BlockSpec((32, 8), lambda i: (0, 0)),        # packed params (one tile)
        ],
        out_specs=pl.BlockSpec((1, n), lambda i: (0, 0)),   # lane-dense score row
    )(xT.astype(jnp.float32), packed)
    return out[0]                                           # [N], matches torch .squeeze()


def linear_forward(x, packed):
    """Torch-natural layout: x [N, 2] -> scores [N].

    Prefer storing node features feature-major ([2, N]) upstream and calling
    linear_forward_xt directly; this compat shim pays one extra transpose.
    """
    return linear_forward_xt(x.T, packed)


def make_params(key):
    ks = jax.random.split(key, 6)
    return {
        "w1":    0.1 * jax.random.normal(ks[0], (2, 32), jnp.float32),
        "b1":    0.1 * jax.random.normal(ks[1], (1, 32), jnp.float32),
        "gamma": jnp.ones((1, 32), jnp.float32),       # BatchNorm1d affine init
        "beta":  jnp.zeros((1, 32), jnp.float32),
        "alpha": jnp.full((1,), 0.25, jnp.float32),    # PReLU default init
        "w2":    0.1 * jax.random.normal(ks[2], (32, 32), jnp.float32),
        "b2":    0.1 * jax.random.normal(ks[3], (1, 32), jnp.float32),
        "wb":    0.1 * jax.random.normal(ks[4], (32, 1), jnp.float32),
        "bb":    0.1 * jax.random.normal(ks[5], (1,), jnp.float32),
    }


def reference_forward(x, params):
    """Pure-JAX reference (unfolded, with b1, centered BatchNorm). x: [N, 2]."""
    h = x @ params["w1"] + params["b1"]                    # [N, 32]
    mean = jnp.mean(h, axis=0, keepdims=True)
    var = jnp.mean((h - mean) ** 2, axis=0, keepdims=True)
    h = (h - mean) * jax.lax.rsqrt(var + 1e-5)
    h = h * params["gamma"] + params["beta"]
    h = jnp.where(h > 0.0, h, params["alpha"][0] * h)
    h = h @ params["w2"] + params["b2"]
    s = h @ params["wb"] + params["bb"]                    # [N, 1]
    return s[:, 0]


if __name__ == "__main__":
    key = jax.random.PRNGKey(0)
    k_x, k_x2, k_p = jax.random.split(key, 3)

    params = make_params(k_p)
    packed = pack_params(params)       # hoisted one-time weight prep

    # graph_body.x for a batch of graphs' nodes, stored feature-major ([2, N])
    # upstream so the forward path needs no transpose (perf-review item 4).
    # N is a multiple of 128, so the [1, N] output row stores lane-dense.
    N = 512
    xT = jax.random.normal(k_x, (2, N), jnp.float32)

    scores = linear_forward_xt(xT, packed)
    jax.block_until_ready(scores)
    assert scores.shape == (N,)

    ref = reference_forward(xT.T, params)
    assert jnp.allclose(scores, ref, rtol=1e-3, atol=1e-4)

    # Arbitrary (non-multiple-of-128) node counts also work: the single block
    # equals the full array, so the (8, 128) divisibility rule does not apply.
    N2 = 200
    x2 = jax.random.normal(k_x2, (N2, 2), jnp.float32)     # torch-natural [N, 2]
    s2 = linear_forward(x2, packed)
    jax.block_until_ready(s2)
    assert s2.shape == (N2,)
    assert jnp.allclose(s2, reference_forward(x2, params), rtol=1e-3, atol=1e-4)

    print("KERNEL_OK")
</pallas_src>

<mosaic_0001>
module attributes {stable_mosaic.version = 11 : i64} {
  func.func @linear_mlp_kernel(%arg0: i32, %arg1: memref<2x512xf32, #tpu.memory_space<vmem>>, %arg2: memref<32x8xf32, #tpu.memory_space<vmem>>, %arg3: memref<1x512xf32, #tpu.memory_space<vmem>>) attributes {dimension_semantics = [#tpu.dimension_semantics<arbitrary>], iteration_bounds = array<i64: 1>, scalar_prefetch = 0 : i64, scratch_operands = 0 : i64, tpu.core_type = #tpu.core_type<tc>, window_params = [{pipeline_mode = #tpu.pipeline_mode<synchronous>, transform_indices = @transform_0, window_bounds = array<i64: 2, 512>}, {pipeline_mode = #tpu.pipeline_mode<synchronous>, transform_indices = @transform_1, window_bounds = array<i64: 32, 8>}, {pipeline_mode = #tpu.pipeline_mode<synchronous>, transform_indices = @transform_2, window_bounds = array<i64: 1, 512>}]} {
    %c0 = arith.constant 0 : index
    %c0_0 = arith.constant 0 : index
    %0 = vector.load %arg1[%c0, %c0_0] : memref<2x512xf32, #tpu.memory_space<vmem>>, vector<1x512xf32>
    %c1 = arith.constant 1 : index
    %c0_1 = arith.constant 0 : index
    %1 = vector.load %arg1[%c1, %c0_1] : memref<2x512xf32, #tpu.memory_space<vmem>>, vector<1x512xf32>
    %c0_2 = arith.constant 0 : index
    %c0_3 = arith.constant 0 : index
    %2 = vector.load %arg2[%c0_2, %c0_3] : memref<32x8xf32, #tpu.memory_space<vmem>>, vector<32x1xf32>
    %c0_4 = arith.constant 0 : index
    %c1_5 = arith.constant 1 : index
    %3 = vector.load %arg2[%c0_4, %c1_5] : memref<32x8xf32, #tpu.memory_space<vmem>>, vector<32x1xf32>
    %c0_6 = arith.constant 0 : index
    %c2 = arith.constant 2 : index
    %4 = vector.load %arg2[%c0_6, %c2] : memref<32x8xf32, #tpu.memory_space<vmem>>, vector<32x1xf32>
    %c0_7 = arith.constant 0 : index
    %c3 = arith.constant 3 : index
    %5 = vector.load %arg2[%c0_7, %c3] : memref<32x8xf32, #tpu.memory_space<vmem>>, vector<32x1xf32>
    %c0_8 = arith.constant 0 : index
    %c4 = arith.constant 4 : index
    %6 = vector.load %arg2[%c0_8, %c4] : memref<32x8xf32, #tpu.memory_space<vmem>>, vector<32x1xf32>
    %c0_9 = arith.constant 0 : index
    %c5 = arith.constant 5 : index
    %7 = vector.load %arg2[%c0_9, %c5] : memref<32x8xf32, #tpu.memory_space<vmem>>, vector<32x1xf32>
    %c0_10 = arith.constant 0 : index
    %c6 = arith.constant 6 : index
    %8 = vector.load %arg2[%c0_10, %c6] : memref<32x8xf32, #tpu.memory_space<vmem>>, vector<1x1xf32>
    %9 = vector.broadcast %2 : vector<32x1xf32> to vector<32x512xf32>
    %10 = vector.broadcast %0 : vector<1x512xf32> to vector<32x512xf32>
    %11 = arith.mulf %9, %10 : vector<32x512xf32>
    %12 = vector.broadcast %3 : vector<32x1xf32> to vector<32x512xf32>
    %13 = vector.broadcast %1 : vector<1x512xf32> to vector<32x512xf32>
    %14 = arith.mulf %12, %13 : vector<32x512xf32>
    %15 = arith.addf %11, %14 : vector<32x512xf32>
    %cst = arith.constant dense<0.000000e+00> : vector<32xf32>
    %16 = vector.multi_reduction <add>, %15, %cst [1] : vector<32x512xf32> to vector<32xf32>
    %17 = vector.shape_cast %16 : vector<32xf32> to vector<32x1xf32>
    %18 = arith.mulf %15, %15 : vector<32x512xf32>
    %cst_11 = arith.constant dense<0.000000e+00> : vector<32xf32>
    %19 = vector.multi_reduction <add>, %18, %cst_11 [1] : vector<32x512xf32> to vector<32xf32>
    %20 = vector.shape_cast %19 : vector<32xf32> to vector<32x1xf32>
    %cst_12 = arith.constant 0.001953125 : f32
    %21 = vector.broadcast %cst_12 : f32 to vector<32x1xf32>
    %22 = arith.mulf %17, %21 : vector<32x1xf32>
    %cst_13 = arith.constant 0.001953125 : f32
    %23 = vector.broadcast %cst_13 : f32 to vector<32x1xf32>
    %24 = arith.mulf %20, %23 : vector<32x1xf32>
    %25 = arith.mulf %22, %22 : vector<32x1xf32>
    %26 = arith.subf %24, %25 : vector<32x1xf32>
    %cst_14 = arith.constant 0.000000e+00 : f32
    %27 = vector.broadcast %cst_14 : f32 to vector<32x1xf32>
    %28 = arith.maximumf %26, %27 : vector<32x1xf32>
    %cst_15 = arith.constant 9.99999974E-6 : f32
    %29 = vector.broadcast %cst_15 : f32 to vector<32x1xf32>
    %30 = arith.addf %28, %29 : vector<32x1xf32>
    %31 = math.rsqrt %30 : vector<32x1xf32>
    %32 = arith.mulf %4, %31 : vector<32x1xf32>
    %33 = vector.broadcast %22 : vector<32x1xf32> to vector<32x512xf32>
    %34 = arith.subf %15, %33 : vector<32x512xf32>
    %35 = vector.broadcast %32 : vector<32x1xf32> to vector<32x512xf32>
    %36 = arith.mulf %34, %35 : vector<32x512xf32>
    %37 = vector.broadcast %5 : vector<32x1xf32> to vector<32x512xf32>
    %38 = arith.addf %36, %37 : vector<32x512xf32>
    %cst_16 = arith.constant 0.000000e+00 : f32
    %39 = vector.broadcast %cst_16 : f32 to vector<32x512xf32>
    %40 = arith.cmpf ogt, %38, %39 : vector<32x512xf32>
    %41 = vector.broadcast %7 : vector<32x1xf32> to vector<32x512xf32>
    %42 = arith.mulf %38, %41 : vector<32x512xf32>
    %43 = arith.select %40, %38, %42 : vector<32x512xi1>, vector<32x512xf32>
    %44 = vector.broadcast %6 : vector<32x1xf32> to vector<32x512xf32>
    %45 = arith.mulf %43, %44 : vector<32x512xf32>
    %cst_17 = arith.constant dense<0.000000e+00> : vector<512xf32>
    %46 = vector.multi_reduction <add>, %45, %cst_17 [0] : vector<32x512xf32> to vector<512xf32>
    %47 = vector.shape_cast %46 : vector<512xf32> to vector<1x512xf32>
    %48 = vector.broadcast %8 : vector<1x1xf32> to vector<1x512xf32>
    %49 = arith.addf %47, %48 : vector<1x512xf32>
    %c0_18 = arith.constant 0 : index
    %c0_19 = arith.constant 0 : index
    %50 = vector.load %arg3[%c0_18, %c0_19] : memref<1x512xf32, #tpu.memory_space<vmem>>, vector<1x512xf32>
    tpu.vector_store %arg3[%c0_18, %c0_19], %49 {strides = array<i32>} : memref<1x512xf32, #tpu.memory_space<vmem>>, vector<1x512xf32>,
    return
  }
  func.func @transform_0(%arg0: i32) -> (i32, i32) {
    %c0_i32 = arith.constant 0 : i32
    %c0_i32_0 = arith.constant 0 : i32
    %c0_i32_1 = arith.constant 0 : i32
    return %c0_i32, %c0_i32_0 : i32, i32
  }
  func.func @transform_1(%arg0: i32) -> (i32, i32) {
    %c0_i32 = arith.constant 0 : i32
    %c0_i32_0 = arith.constant 0 : i32
    %c0_i32_1 = arith.constant 0 : i32
    return %c0_i32, %c0_i32_0 : i32, i32
  }
  func.func @transform_2(%arg0: i32) -> (i32, i32) {
    %c0_i32 = arith.constant 0 : i32
    %c0_i32_0 = arith.constant 0 : i32
    %c0_i32_1 = arith.constant 0 : i32
    return %c0_i32, %c0_i32_0 : i32, i32
  }
}

</mosaic_0001>

<bundles_post_ra>
// kernel: linear_forward_xt.1
= control target key start
LH: loop header
LB: loop body
LE: loop exit
PB: predicated region body
PF: predicated region fallthrough
CT: control target
= control target key end

     0   :  { %v561_v1 = vmov 1   ;;  %v562_v2 = vmov 0   ;;  %s820_s0 = inlined_call_operand.vmem [shape: f32[2,512], index: 0, kind: input, shape index: {}]   ;;  %s821_s1 = inlined_call_operand.vmem [shape: f32[32,8], index: 1, kind: input, shape index: {}]   ;;  %s822_s2 = inlined_call_operand.hbm [shape: f32[1,512], index: 2, kind: output, shape index: {}]  }
   0x1   :  { %v588_v0 = vld [vmem:[%s821_s1] sm:$0xff]  ;;  %518 = vset.pattern.permute.xlu1 %v561_v1  ;;  %517 = vset.pattern.permute.xlu0 %v562_v2 }
   0x2   :  { %7 = vsyncpa [#allocation3], 0  ;;  %78 = vperm.xlu1 %518, %v588_v0   ;;  %22 = vperm.xlu0 %517, %v588_v0   ;;  %v595_v3 = vld [vmem:[%s821_s1 + $0x8] sm:$0xff]  ;;  %v602_v4 = vld [vmem:[%s821_s1 + $0x10] sm:$0xff]  ;;  %v563_v6 = vmov 3   ;;  %v41_v7 = vlaneseq }
   0x3   :  { %v609_v5 = vld [vmem:[%s821_s1 + $0x18] sm:$0xff]  ;;  %v507_v11 = vld [vmem:[%s820_s0 + $0x1] ss:$2 sm:$0xf] }
   0x4   :  { %v615_v8 = vshrl.u32 %v41_v7, 7  ;;  %v12_v14 = vld [vmem:[%s820_s0] ss:$2 sm:$0xf] }
   0x6   :  { %82 = vperm.xlu1 %518, %v595_v3   ;;  %27 = vperm.xlu0 %517, %v595_v3   ;;  %v43_v9 = vsub.s32 0, %v615_v8  ;;  %v47_v10 = vsub.s32 1, %v615_v8  ;;  %v51_v12 = vsub.s32 2, %v615_v8  ;;  %v55_v13 = vsub.s32 3, %v615_v8 }
   0x8   :  { %v97_v15 = vrot.slane %v507_v11, %v43_v9  ;;  %v101_v16 = vrot.slane %v507_v11, %v47_v10  ;;  %v44_v17 = vrot.slane %v12_v14, %v43_v9  ;;  %v48_v18 = vrot.slane %v12_v14, %v47_v10 }
   0x9   :  { %v105_v19 = vrot.slane %v507_v11, %v51_v12  ;;  %v627_v20 = vrot.slane %v507_v11, %v55_v13  ;;  %v52_v21 = vrot.slane %v12_v14, %v51_v12  ;;  %v629_v22 = vrot.slane %v12_v14, %v55_v13 }
   0xa   :  { %86 = vperm.xlu1 %518, %v602_v4   ;;  %32 = vperm.xlu0 %517, %v602_v4  }
   0xe   :  { %90 = vperm.xlu1 %518, %v609_v5   ;;  %37 = vperm.xlu0 %517, %v609_v5  }
  0x12   :  { %519 = vset.pattern.permute.xlu1 %v563_v6 }
  0x7d   :  { %v79_v23 = vpop.permute.xlu1 %78  ;;  %v23_v24 = vpop.permute.xlu0 %22 }
  0x7e   :  { %v114_v25 = vmul.f32 %v97_v15, %v79_v23  ;;  %v115_v26 = vmul.f32 %v101_v16, %v79_v23  ;;  %v61_v27 = vmul.f32 %v44_v17, %v23_v24  ;;  %v62_v28 = vmul.f32 %v48_v18, %v23_v24 }
  0x7f   :  { %v116_v29 = vmul.f32 %v105_v19, %v79_v23  ;;  %v117_v30 = vmul.f32 %v627_v20, %v79_v23  ;;  %v63_v31 = vmul.f32 %v52_v21, %v23_v24  ;;  %v64_v32 = vmul.f32 %v629_v22, %v23_v24 }
  0x80   :  { %v633_v33 = vadd.f32 %v114_v25, %v61_v27  ;;  %v635_v34 = vadd.f32 %v115_v26, %v62_v28 }
  0x81   :  { %v83_v35 = vpop.permute.xlu1 %82  ;;  %v28_v36 = vpop.permute.xlu0 %27  ;;  %v637_v43 = vadd.f32 %v116_v29, %v63_v31  ;;  %v640_v45 = vadd.f32 %v117_v30, %v64_v32 }
  0x82   :  { %v118_v37 = vmul.f32 %v97_v15, %v83_v35  ;;  %v119_v38 = vmul.f32 %v101_v16, %v83_v35  ;;  %v120_v39 = vmul.f32 %v105_v19, %v83_v35  ;;  %v65_v40 = vmul.f32 %v44_v17, %v28_v36 }
  0x83   :  { %v66_v41 = vmul.f32 %v48_v18, %v28_v36  ;;  %v67_v42 = vmul.f32 %v52_v21, %v28_v36  ;;  %v121_v44 = vmul.f32 %v627_v20, %v83_v35  ;;  %v146_v46 = vadd.f32 %v635_v34, %v633_v33 }
  0x84   :  { %v68_v47 = vmul.f32 %v629_v22, %v28_v36  ;;  %v645_v48 = vadd.f32 %v118_v37, %v65_v40  ;;  %v166_v52 = vmul.f32 %v633_v33, %v633_v33  ;;  %v167_v56 = vmul.f32 %v635_v34, %v635_v34 }
  0x85   :  { %v647_v49 = vadd.f32 %v119_v38, %v66_v41  ;;  %v87_v50 = vpop.permute.xlu1 %86  ;;  %v33_v51 = vpop.permute.xlu0 %32  ;;  %v651_v53 = vadd.f32 %v120_v39, %v67_v42  ;;  %v147_v61 = vadd.f32 %v146_v46, %v637_v43 }
  0x86   :  { %v122_v54 = vmul.f32 %v97_v15, %v87_v50  ;;  %v123_v55 = vmul.f32 %v101_v16, %v87_v50  ;;  %v124_v57 = vmul.f32 %v105_v19, %v87_v50  ;;  %v69_v58 = vmul.f32 %v44_v17, %v33_v51 }
  0x87   :  { %v70_v59 = vmul.f32 %v48_v18, %v33_v51  ;;  %v71_v60 = vmul.f32 %v52_v21, %v33_v51  ;;  %v151_v62 = vadd.f32 %v647_v49, %v645_v48  ;;  %v170_v63 = vmul.f32 %v645_v48, %v645_v48 }
  0x88   :  { %v171_v1 = vmul.f32 %v647_v49, %v647_v49  ;;  %v125_v2 = vmul.f32 %v627_v20, %v87_v50  ;;  %v72_v9 = vmul.f32 %v629_v22, %v33_v51  ;;  %v664_v10 = vadd.f32 %v122_v54, %v69_v58 }
  0x89   :  { %v91_v11 = vpop.permute.xlu1 %90  ;;  %v38_v12 = vpop.permute.xlu0 %37  ;;  %v666_v13 = vadd.f32 %v121_v44, %v68_v47  ;;  %v668_v14 = vadd.f32 %v123_v55, %v70_v59  ;;  %v148_v23 = vadd.f32 %v147_v61, %v640_v45  ;;  %v671_v30 = vadd.f32 %v124_v57, %v71_v60 }
  0x8a   :  { %v126_v24 = vmul.f32 %v97_v15, %v91_v11  ;;  %v127_v25 = vmul.f32 %v101_v16, %v91_v11  ;;  %v128_v26 = vmul.f32 %v105_v19, %v91_v11  ;;  %v73_v27 = vmul.f32 %v44_v17, %v38_v12 }
  0x8b   :  { %v74_v28 = vmul.f32 %v48_v18, %v38_v12  ;;  %v75_v29 = vmul.f32 %v52_v21, %v38_v12  ;;  %149 = vadd.xlane.f32.xlu0 %v148_v23  ;;  %v152_v31 = vadd.f32 %v151_v62, %v651_v53  ;;  %v172_v32 = vmul.f32 %v651_v53, %v651_v53 }
  0x8c   :  { %v187_v35 = vadd.f32 %v171_v1, %v170_v63  ;;  %v129_v36 = vmul.f32 %v627_v20, %v91_v11  ;;  %v76_v37 = vmul.f32 %v629_v22, %v38_v12  ;;  %v678_v38 = vadd.f32 %v126_v24, %v73_v27 }
  0x8d   :  { %v680_v15 = vadd.f32 %v127_v25, %v74_v28  ;;  %v153_v16 = vadd.f32 %v152_v31, %v666_v13  ;;  %v156_v18 = vadd.f32 %v668_v14, %v664_v10  ;;  %v174_v19 = vmul.f32 %v664_v10, %v664_v10 }
  0x8e   :  { %v188_v17 = vadd.f32 %v187_v35, %v172_v32  ;;  %v687_v21 = vadd.f32 %v128_v26, %v75_v29  ;;  %v173_v20 = vmul.f32 %v666_v13, %v666_v13  ;;  %v175_v22 = vmul.f32 %v668_v14, %v668_v14 }
  0x8f   :  { %154 = vadd.xlane.f32.xlu1 %v153_v16  ;;  %v693_v39 = vadd.f32 %v125_v2, %v72_v9  ;;  %v157_v40 = vadd.f32 %v156_v18, %v671_v30  ;;  %v176_v41 = vmul.f32 %v671_v30, %v671_v30  ;;  %v161_v42 = vadd.f32 %v680_v15, %v678_v38 }
  0x90   :  { %v189_v44 = vadd.f32 %v188_v17, %v173_v20  ;;  %v192_v46 = vadd.f32 %v175_v22, %v174_v19  ;;  %v700_v47 = vadd.f32 %v129_v36, %v76_v37  ;;  %v182_v50 = vadd.f32 %v167_v56, %v166_v52 }
  0x91   :  { %v158_v51 = vadd.f32 %v157_v40, %v693_v39  ;;  %v162_v54 = vadd.f32 %v161_v42, %v687_v21  ;;  %v178_v55 = vmul.f32 %v678_v38, %v678_v38  ;;  %v179_v57 = vmul.f32 %v680_v15, %v680_v15 }
  0x92   :  { %v193_v58 = vadd.f32 %v192_v46, %v176_v41  ;;  %v177_v59 = vmul.f32 %v693_v39, %v693_v39  ;;  %v168_v52 = vmul.f32 %v637_v43, %v637_v43  ;;  %v169_v63 = vmul.f32 %v640_v45, %v640_v45 }
  0x93   :  { %190 = vadd.xlane.f32.xlu1 %v189_v44  ;;  %159 = vadd.xlane.f32.xlu0 %v158_v51  ;;  %v163_v60 = vadd.f32 %v162_v54, %v700_v47  ;;  %v197_v62 = vadd.f32 %v179_v57, %v178_v55  ;;  %v180_v1 = vmul.f32 %v687_v21, %v687_v21  ;;  %v564_v23 = vmov 5  }
  0x94   :  { %v194_v56 = vadd.f32 %v193_v58, %v177_v59  ;;  %v183_v61 = vadd.f32 %v182_v50, %v168_v52  ;;  %v181_v11 = vmul.f32 %v700_v47, %v700_v47  ;;  %522 = vset.pattern.permute.xlu0 %v564_v23  ;;  %v565_v24 = vmov 2  }
  0x95   :  { %v198_v9 = vadd.f32 %v197_v62, %v180_v1  ;;  %v566_v25 = vmov 4  }
  0x96   :  { %v184_v2 = vadd.f32 %v183_v61, %v169_v63 }
  0x97   :  { %195 = vadd.xlane.f32.xlu1 %v194_v56  ;;  %164 = vadd.xlane.f32.xlu0 %v163_v60  ;;  %v199_v12 = vadd.f32 %v198_v9, %v181_v11 }
  0x9b   :  { %185 = vadd.xlane.f32.xlu0 %v184_v2 }
  0x9f   :  { %200 = vadd.xlane.f32.xlu0 %v199_v12 }
  0xa8   :  { %287 = vperm.xlu1 %519, %v588_v0  }
  0xac   :  { %291 = vperm.xlu1 %519, %v595_v3  }
  0xb0   :  { %295 = vperm.xlu1 %519, %v602_v4  }
  0xb4   :  { %520 = vset.pattern.permute.xlu1 %v564_v23 }
  0xb5   :  { %335 = vperm.xlu1 %520, %v588_v0   ;;  %343 = vperm.xlu0 %522, %v602_v4  }
  0xb9   :  { %339 = vperm.xlu1 %520, %v595_v3   ;;  %525 = vset.pattern.permute.xlu0 %v565_v24 }
  0xbd   :  { %521 = vset.pattern.permute.xlu1 %v563_v6 }
  0xbe   :  { %299 = vperm.xlu1 %521, %v609_v5  }
  0xc2   :  { %523 = vset.pattern.permute.xlu1 %v566_v25 }
  0xc3   :  { %383 = vperm.xlu1 %523, %v588_v0  }
  0xc7   :  { %524 = vset.pattern.permute.xlu1 %v565_v24 }
 0x114   :  { %v150_v26 = vpop.xlane.xlu0 %149 }
 0x115   :  { %v734_v17 = vmul.f32 0.001953125, %v150_v26  ;;  %v567_v26 = vmov 6  }
 0x117   :  { %v210_v44 = vmul.f32 %v734_v17, %v734_v17 }
 0x118   :  { %v155_v27 = vpop.xlane.xlu1 %154 }
 0x119   :  { %v728_v28 = vmul.f32 0.001953125, %v155_v27 }
 0x11b   :  { %v211_v32 = vmul.f32 %v728_v28, %v728_v28 }
 0x11c   :  { %v191_v29 = vpop.xlane.xlu1 %190  ;;  %v160_v31 = vpop.xlane.xlu0 %159 }
 0x11d   :  { %v207_v35 = vmul.f32 0.001953125, %v191_v29  ;;  %v732_v36 = vmul.f32 0.001953125, %v160_v31 }
 0x11f   :  { %v215_v6 = vsub.f32 %v207_v35, %v211_v32  ;;  %v212_v20 = vmul.f32 %v732_v36, %v732_v36 }
 0x120   :  { %v196_v37 = vpop.xlane.xlu1 %195  ;;  %v165_v16 = vpop.xlane.xlu0 %164 }
 0x121   :  { %v219_v18 = vmax.f32 %v215_v6, 0.0  ;;  %v208_v19 = vmul.f32 0.001953125, %v196_v37  ;;  %v738_v42 = vmul.f32 0.001953125, %v165_v16  ;;  %v241_v6 = vsub.f32 %v666_v13, %v728_v28 }
 0x122   :  { %v236_v13 = vsub.f32 %v637_v43, %v734_v17 }
 0x123   :  { %v223_v22 = vadd.f32 1e-05, %v219_v18  ;;  %v216_v40 = vsub.f32 %v208_v19, %v212_v20  ;;  %v213_v57 = vmul.f32 %v738_v42, %v738_v42 }
 0x124   :  { %v186_v41 = vpop.xlane.xlu0 %185 }
 0x125   :  { %531 = vrsqrt.f32 %v223_v22  ;;  %v206_v46 = vmul.f32 0.001953125, %v186_v41  ;;  %v220_v50 = vmax.f32 %v216_v40, 0.0 }
 0x127   :  { %v214_v51 = vsub.f32 %v206_v46, %v210_v44  ;;  %v224_v59 = vadd.f32 1e-05, %v220_v50 }
 0x128   :  { %v201_v54 = vpop.xlane.xlu0 %200 }
 0x129   :  { %v218_v55 = vmax.f32 %v214_v51, 0.0  ;;  %v209_v58 = vmul.f32 0.001953125, %v201_v54 }
 0x12b   :  { %v222_v60 = vadd.f32 1e-05, %v218_v55  ;;  %v217_v52 = vsub.f32 %v209_v58, %v213_v57 }
 0x12d   :  { %533 = vrsqrt.f32 %v222_v60  ;;  %v221_v56 = vmax.f32 %v217_v52, 0.0 }
 0x12e   :  { %535 = vrsqrt.f32 %v224_v59 }
 0x12f   :  { %v225_v61 = vadd.f32 1e-05, %v221_v56  ;;  %v244_v56 = vsub.f32 %v671_v30, %v732_v36 }
 0x130   :  { %v757_v32 = vpop.permute.xlu0 %343 }
 0x131   :  { %537 = vrsqrt.f32 %v225_v61  ;;  %v245_v61 = vsub.f32 %v693_v39, %v732_v36 }
 0x132   :  { %v532_v62 = vpop.eup %531 }
 0x133   :  { %v231_v63 = vmul.f32 %v532_v62, %v595_v3 }
 0x135   :  { %257 = vperm.xlu0 %525, %v231_v63   ;;  %v246_v63 = vsub.f32 %v678_v38, %v738_v42 }
 0x139   :  { %527 = vset.pattern.permute.xlu0 %v564_v23  ;;  %v288_v23 = vpop.permute.xlu1 %287 }
 0x13a   :  { %v534_v1 = vpop.eup %533  ;;  %347 = vperm.xlu0 %527, %v609_v5  }
 0x13b   :  { %v230_v2 = vmul.f32 %v534_v1, %v588_v0  ;;  %v536_v9 = vpop.eup %535  ;;  %v19_v0 = vld [vmem:[%s821_s1] sm:$0x1]  ;;  %v247_v1 = vsub.f32 %v680_v15, %v738_v42  ;;  %s569_s1 = smov [#allocation2]  }
 0x13c   :  { %v232_v11 = vmul.f32 %v536_v9, %v602_v4  ;;  %s499_s22 = sshll.u32 %s569_s1, 4  ;;  %s500_s22 = int_to_ptr.vmem [resolvable:$true] %s499_s22 }
 0x13d   :  { %252 = vperm.xlu1 %524, %v230_v2   ;;  %v292_v27 = vpop.permute.xlu1 %291  ;;  %v248_v2 = vsub.f32 %v687_v21, %v738_v42  ;;  %s539_s23 = scalar_lea.vmem %s500_s22, 64  ;;  %p544_p1 = scmp.lt.s32.totalorder %s500_s22, %s500_s22 }
 0x13e   :  { %528 = vset.pattern.permute.xlu0 %v566_v25  ;;  %v538_v12 = vpop.eup %537  ;;  %p540_p0 = scmp.ne.s32.totalorder %s500_s22, %s539_s23  ;;  %p545_p2 = scmp.lt.s32.totalorder %s539_s23, %s539_s23 }
 0x13f   :  { %395 = vperm.xlu0 %528, %v609_v5   ;;  %v233_v24 = vmul.f32 %v538_v12, %v609_v5 }
 0x140   :  { %p546_p3 = por %p545_p2, %p544_p1 }
 0x141   :  { %262 = vperm.xlu1 %524, %v232_v11   ;;  %v755_v29 = vpop.permute.xlu1 %295 }
 0x142   :  { %p547_p4 = pnand %p546_p3, %p540_p0 }
 0x143   :  { %530 = vset.pattern.permute.xlu0 %v567_v26 }
 0x145   :  { %267 = vperm.xlu1 %524, %v233_v24   ;;  %v336_v31 = vpop.permute.xlu1 %335 }
 0x149   :  { %526 = vset.pattern.permute.xlu1 %v566_v25  ;;  %v340_v5 = vpop.permute.xlu1 %339  ;;  %v240_v25 = vsub.f32 %v651_v53, %v728_v28  ;;  %v235_v53 = vsub.f32 %v635_v34, %v734_v17 }
 0x14a   :  { %387 = vperm.xlu1 %526, %v595_v3   ;;  %v238_v3 = vsub.f32 %v645_v48, %v728_v28 }
 0x14d   :  { %v759_v35 = vpop.permute.xlu1 %299 }
 0x14e   :  { %391 = vperm.xlu1 %526, %v602_v4   ;;  %v239_v4 = vsub.f32 %v647_v49, %v728_v28  ;;  %v234_v49 = vsub.f32 %v633_v33, %v734_v17  ;;  %v237_v28 = vsub.f32 %v640_v45, %v734_v17  ;;  %v242_v45 = vsub.f32 %v664_v10, %v732_v36 }
 0x14f   :  { %v243_v17 = vsub.f32 %v668_v14, %v732_v36  ;;  %v249_v10 = vsub.f32 %v700_v47, %v738_v42 }
 0x151   :  { %v769_v22 = vpop.permute.xlu1 %383 }
 0x152   :  { %529 = vset.pattern.permute.xlu1 %v567_v26 }
 0x153   :  { %452 = vperm.xlu1 %529, %v19_v0  }
 0x1b0   :  { %v258_v37 = vpop.permute.xlu0 %257 }
 0x1b1   :  { %v274_v16 = vmul.f32 %v258_v37, %v238_v3  ;;  %v275_v18 = vmul.f32 %v258_v37, %v239_v4  ;;  %v276_v19 = vmul.f32 %v258_v37, %v240_v25  ;;  %v277_v20 = vmul.f32 %v258_v37, %v241_v6 }
 0x1b3   :  { %v306_v40 = vadd.f32 %v292_v27, %v274_v16  ;;  %v307_v41 = vadd.f32 %v292_v27, %v275_v18  ;;  %v308_v44 = vadd.f32 %v292_v27, %v276_v19  ;;  %v309_v48 = vadd.f32 %v292_v27, %v277_v20 }
 0x1b5   :  { %vm322_vm0 = vcmp.gt.f32.partialorder %v306_v40, 0.0  ;;  %vm323_vm1 = vcmp.gt.f32.partialorder %v307_v41, 0.0  ;;  %vm324_vm2 = vcmp.gt.f32.partialorder %v308_v44, 0.0  ;;  %vm325_vm3 = vcmp.gt.f32.partialorder %v309_v48, 0.0 }
 0x1b6   :  { %v354_v57 = vmul.f32 %v340_v5, %v306_v40  ;;  %v355_v33 = vmul.f32 %v340_v5, %v307_v41  ;;  %v356_v58 = vmul.f32 %v340_v5, %v308_v44  ;;  %v357_v59 = vmul.f32 %v340_v5, %v309_v48 }
 0x1b8   :  { %v253_v46 = vpop.permute.xlu1 %252  ;;  %v370_v14 = vsel %vm322_vm0, %v306_v40, %v354_v57  ;;  %v371_v30 = vsel %vm323_vm1, %v307_v41, %v355_v33  ;;  %v372_v9 = vsel %vm324_vm2, %v308_v44, %v356_v58  ;;  %v373_v39 = vsel %vm325_vm3, %v309_v48, %v357_v59  ;;  %v348_v41 = vpop.permute.xlu0 %347 }
 0x1b9   :  { %v270_v50 = vmul.f32 %v253_v46, %v234_v49  ;;  %v271_v51 = vmul.f32 %v253_v46, %v235_v53  ;;  %v272_v54 = vmul.f32 %v253_v46, %v236_v13  ;;  %v273_v55 = vmul.f32 %v253_v46, %v237_v28 }
 0x1ba   :  { %vm490_vm0 = vcmp.lt.s32.totalorder %v41_v7, 512 }
 0x1bb   :  { %v302_v34 = vadd.f32 %v288_v23, %v270_v50  ;;  %v303_v60 = vadd.f32 %v288_v23, %v271_v51  ;;  %v304_v52 = vadd.f32 %v288_v23, %v272_v54  ;;  %v305_v43 = vadd.f32 %v288_v23, %v273_v55 }
 0x1bc   :  { %v263_v62 = vpop.permute.xlu1 %262 }
 0x1bd   :  { %v350_v36 = vmul.f32 %v336_v31, %v302_v34  ;;  %v351_v11 = vmul.f32 %v336_v31, %v303_v60  ;;  %v352_v38 = vmul.f32 %v336_v31, %v304_v52  ;;  %v353_v12 = vmul.f32 %v336_v31, %v305_v43 }
 0x1be   :  { %vm318_vm4 = vcmp.gt.f32.partialorder %v302_v34, 0.0  ;;  %vm319_vm5 = vcmp.gt.f32.partialorder %v303_v60, 0.0  ;;  %vm320_vm6 = vcmp.gt.f32.partialorder %v304_v52, 0.0  ;;  %vm321_vm7 = vcmp.gt.f32.partialorder %v305_v43, 0.0 }
 0x1bf   :  { %v278_v21 = vmul.f32 %v263_v62, %v242_v45  ;;  %v279_v24 = vmul.f32 %v263_v62, %v243_v17  ;;  %v280_v47 = vmul.f32 %v263_v62, %v244_v56  ;;  %v281_v42 = vmul.f32 %v263_v62, %v245_v61  ;;  %v396_v62 = vpop.permute.xlu0 %395 }
 0x1c0   :  { %v268_v15 = vpop.permute.xlu1 %267  ;;  %v366_v5 = vsel %vm318_vm4, %v302_v34, %v350_v36  ;;  %v367_v3 = vsel %vm319_vm5, %v303_v60, %v351_v11  ;;  %v368_v4 = vsel %vm320_vm6, %v304_v52, %v352_v38  ;;  %v369_v25 = vsel %vm321_vm7, %v305_v43, %v353_v12 }
 0x1c1   :  { %v282_v26 = vmul.f32 %v268_v15, %v246_v63  ;;  %v283_v0 = vmul.f32 %v268_v15, %v247_v1  ;;  %v284_v23 = vmul.f32 %v268_v15, %v248_v2  ;;  %v285_v27 = vmul.f32 %v268_v15, %v249_v10 }
 0x1c2   :  { %v310_v18 = vadd.f32 %v755_v29, %v278_v21  ;;  %v311_v19 = vadd.f32 %v755_v29, %v279_v24  ;;  %v312_v20 = vadd.f32 %v755_v29, %v280_v47  ;;  %v313_v40 = vadd.f32 %v755_v29, %v281_v42 }
 0x1c3   :  { %v314_v6 = vadd.f32 %v759_v35, %v282_v26  ;;  %v315_v31 = vadd.f32 %v759_v35, %v283_v0  ;;  %v316_v37 = vadd.f32 %v759_v35, %v284_v23  ;;  %v317_v16 = vadd.f32 %v759_v35, %v285_v27 }
 0x1c4   :  { %v398_v48 = vmul.f32 %v769_v22, %v366_v5  ;;  %v399_v49 = vmul.f32 %v769_v22, %v367_v3  ;;  %v400_v53 = vmul.f32 %v769_v22, %v368_v4  ;;  %v401_v13 = vmul.f32 %v769_v22, %v369_v25 }
 0x1c5   :  { %v388_v44 = vpop.permute.xlu1 %387  ;;  %v362_v51 = vmul.f32 %v348_v41, %v314_v6  ;;  %v363_v54 = vmul.f32 %v348_v41, %v315_v31  ;;  %v364_v55 = vmul.f32 %v348_v41, %v316_v37  ;;  %v365_v57 = vmul.f32 %v348_v41, %v317_v16 }
 0x1c6   :  { %v402_v28 = vmul.f32 %v388_v44, %v370_v14  ;;  %v403_v35 = vmul.f32 %v388_v44, %v371_v30  ;;  %v404_v46 = vmul.f32 %v388_v44, %v372_v9  ;;  %v405_v50 = vmul.f32 %v388_v44, %v373_v39 }
 0x1c7   :  { %vm330_vm8 = vcmp.gt.f32.partialorder %v314_v6, 0.0  ;;  %vm331_vm9 = vcmp.gt.f32.partialorder %v315_v31, 0.0  ;;  %vm332_vm10 = vcmp.gt.f32.partialorder %v316_v37, 0.0  ;;  %vm333_vm11 = vcmp.gt.f32.partialorder %v317_v16, 0.0 }
 0x1c8   :  { %v414_v33 = vadd.f32 %v402_v28, %v398_v48  ;;  %v423_v29 = vadd.f32 %v403_v35, %v399_v49  ;;  %v432_v58 = vadd.f32 %v404_v46, %v400_v53  ;;  %v441_v59 = vadd.f32 %v405_v50, %v401_v13 }
 0x1c9   :  { %vm326_vm12 = vcmp.gt.f32.partialorder %v310_v18, 0.0  ;;  %vm327_vm13 = vcmp.gt.f32.partialorder %v311_v19, 0.0  ;;  %vm328_vm14 = vcmp.gt.f32.partialorder %v312_v20, 0.0  ;;  %vm329_vm15 = vcmp.gt.f32.partialorder %v313_v40, 0.0  ;;  %v392_v22 = vpop.permute.xlu1 %391 }
 0x1ca   :  { %v358_v34 = vmul.f32 %v757_v32, %v310_v18  ;;  %v359_v60 = vmul.f32 %v757_v32, %v311_v19  ;;  %v360_v52 = vmul.f32 %v757_v32, %v312_v20  ;;  %v361_v43 = vmul.f32 %v757_v32, %v313_v40 }
 0x1cb   :  { %v378_v45 = vsel %vm330_vm8, %v314_v6, %v362_v51  ;;  %v379_v17 = vsel %vm331_vm9, %v315_v31, %v363_v54  ;;  %v380_v56 = vsel %vm332_vm10, %v316_v37, %v364_v55  ;;  %v381_v61 = vsel %vm333_vm11, %v317_v16, %v365_v57 }
 0x1cc   :  { %v374_v63 = vsel %vm326_vm12, %v310_v18, %v358_v34  ;;  %v375_v1 = vsel %vm327_vm13, %v311_v19, %v359_v60  ;;  %v376_v2 = vsel %vm328_vm14, %v312_v20, %v360_v52  ;;  %v377_v10 = vsel %vm329_vm15, %v313_v40, %v361_v43 }
 0x1cd   :  { %v406_v14 = vmul.f32 %v392_v22, %v374_v63  ;;  %v407_v30 = vmul.f32 %v392_v22, %v375_v1  ;;  %v408_v9 = vmul.f32 %v392_v22, %v376_v2  ;;  %v409_v39 = vmul.f32 %v392_v22, %v377_v10 }
 0x1ce   :  { %v410_v36 = vmul.f32 %v396_v62, %v378_v45  ;;  %v411_v11 = vmul.f32 %v396_v62, %v379_v17  ;;  %v412_v38 = vmul.f32 %v396_v62, %v380_v56  ;;  %v413_v12 = vmul.f32 %v396_v62, %v381_v61  ;;  %v453_v50 = vpop.permute.xlu1 %452 }
 0x1cf   :  { %v415_v15 = vadd.f32 %v414_v33, %v406_v14  ;;  %v424_v21 = vadd.f32 %v423_v29, %v407_v30  ;;  %v433_v32 = vadd.f32 %v432_v58, %v408_v9  ;;  %v442_v24 = vadd.f32 %v441_v59, %v409_v39 }
 0x1d0   :  { %v568_v37 = vmov 1966171168  }
 0x1d1   :  { %v416_v47 = vadd.f32 %v415_v15, %v410_v36  ;;  %v425_v42 = vadd.f32 %v424_v21, %v411_v11  ;;  %v434_v26 = vadd.f32 %v433_v32, %v412_v38  ;;  %v443_v0 = vadd.f32 %v442_v24, %v413_v12 }
 0x1d2   :  { %v466_v16 = vunpack.c.l.s4 %v568_v37 }
 0x1d3   :  { %v417_v23 = vrot.slane %v416_v47, 4  ;;  %v426_v27 = vrot.slane %v425_v42, 4  ;;  %v435_v5 = vrot.slane %v434_v26, 4  ;;  %v444_v3 = vrot.slane %v443_v0, 4 }
 0x1d4   :  { %v467_v53 = vunpack.c.0.s8 %v466_v16 }
 0x1d5   :  { %v418_v4 = vadd.f32 %v417_v23, %v416_v47  ;;  %v427_v25 = vadd.f32 %v426_v27, %v425_v42  ;;  %v436_v6 = vadd.f32 %v435_v5, %v434_v26  ;;  %v445_v31 = vadd.f32 %v444_v3, %v443_v0 }
 0x1d6   :  { %v470_v33 = vsub.s32 %v467_v53, %v615_v8 }
 0x1d7   :  { %v419_v18 = vrot.slane %v418_v4, 2  ;;  %v428_v19 = vrot.slane %v427_v25, 2  ;;  %v437_v20 = vrot.slane %v436_v6, 2  ;;  %v446_v40 = vrot.slane %v445_v31, 2 }
 0x1d9   :  { %v420_v41 = vadd.f32 %v419_v18, %v418_v4  ;;  %v429_v44 = vadd.f32 %v428_v19, %v427_v25  ;;  %v438_v48 = vadd.f32 %v437_v20, %v436_v6  ;;  %v447_v49 = vadd.f32 %v446_v40, %v445_v31 }
 0x1db   :  { %v421_v13 = vrot.slane %v420_v41, 1  ;;  %v430_v28 = vrot.slane %v429_v44, 1  ;;  %v439_v35 = vrot.slane %v438_v48, 1  ;;  %v448_v46 = vrot.slane %v447_v49, 1 }
 0x1dd   :  { %v422_v51 = vadd.f32 %v421_v13, %v420_v41  ;;  %v431_v54 = vadd.f32 %v430_v28, %v429_v44  ;;  %v440_v55 = vadd.f32 %v439_v35, %v438_v48  ;;  %v449_v57 = vadd.f32 %v448_v46, %v447_v49 }
 0x1df   :  { %v455_v29 = vadd.f32 %v453_v50, %v422_v51  ;;  %v456_v58 = vadd.f32 %v453_v50, %v431_v54  ;;  %v457_v59 = vadd.f32 %v453_v50, %v440_v55  ;;  %v458_v22 = vadd.f32 %v453_v50, %v449_v57 }
 0x1e1   :  { %v463_v34 = vcombine.low %v455_v29, %v456_v58  ;;  %v464_v60 = vcombine.low %v457_v59, %v458_v22 }
 0x1e3   :  { %v471_v52 = vrot.slane %v463_v34, %v470_v33  ;;  %v478_v43 = vrot.slane %v464_v60, %v470_v33 }
 0x1e5   :  { %v479_v45 = vcombine.low %v471_v52, %v478_v43 }
 0x1e7   :  { %v486_v17 = vrot.slane %v479_v45, %v470_v33 }
 0x1e9   :  { %492 = vst.msk [vmem:[#allocation2] sm:$0xf] %vm490_vm0, %v486_v17 }
 0x1ea   :  { %550 = shalt.err (!%p547_p4)
}
 0x1eb   :  { %502 = dma.vmem_to_hbm [thread:$0]  %s500_s22, 64, %s822_s2, [#allocation3]  }
 0x1ec   :  { %559 = dma.done.wait [#allocation3], 64  }
 0x1ed   :  { %560 = vsyncadd [#allocation3], 4294967232 }
 0x1ee   :  { %506 = vsyncpa [#allocation3], 1 }

</bundles_post_ra>
